<compile_context>
chip_gen: v7x
topology: tpu7x:2x2x1
jax: 0.10.0
libtpu: 0.0.40
codegen_flags: <defaults>
</compile_context>

<pallas_src>
import functools

import jax
import jax.numpy as jnp
import numpy as np
from jax import lax
from jax.experimental import pallas as pl
from jax.experimental.pallas import tpu as pltpu


N_CAT_FEATURES = 3      # clinical categorical features
CAT_VOCAB = 10          # vocab size per categorical feature
EMB_DIM = 8             # embedding dim per categorical feature

LANE = 128
SUBLANE = 8
HEADS_PAD = 128         # lane-dense width of the packed heads output slab


def _round_up(x, m):
    return ((x + m - 1) // m) * m


# ----------------------------------------------------------------------------
# Single fused kernel.
#   slab      = tanh(x_cat @ W_proj + b_proj)              (Bp, M*L) = reps
#   h         = tanh(slab @ Wa_blockdiag + ba)             (Bp, M*L)
#   s_exp     = h @ Va_expanded                            (Bp, M*L)
#               (lanes m*L..(m+1)*L-1 all hold score_m)
#   attn_exp  = lane-expanded softmax over modalities      (Bp, M*L)
#   weighted  = attn_exp * slab                            (Bp, M*L)
#   heads_raw = weighted @ W_heads_tiled + b_heads         (Bp, 128)
#               (== fused @ [Wh | Wl | 0..] + b, since the tiled weight sums
#                the weighted per-modality reps inside the matmul)
#   out lane 0 = hazard, lanes 1:3 = log_softmax(label logits), rest = 0.
# ----------------------------------------------------------------------------
def _net_fused_kernel(*refs, num_modalities, m_length):
    M, L = num_modalities, m_length
    if M > 1:
        (x_ref, wproj_ref, bproj_ref, wa_ref, ba_ref, vexp_ref,
         wheads_ref, bheads_ref, reps_ref, heads_ref) = refs
    else:
        (x_ref, wproj_ref, bproj_ref,
         wheads_ref, bheads_ref, reps_ref, heads_ref) = refs

    # one block-diagonal MXU pass covers every modality sub-model projection
    slab = jnp.tanh(
        jnp.dot(x_ref[...], wproj_ref[...],
                preferred_element_type=jnp.float32) + bproj_ref[...])
    reps_ref[...] = slab                                    # (Bp, M*L)

    if M > 1:
        # additive attention, batched over modalities via block-diag weights
        h = jnp.tanh(
            jnp.dot(slab, wa_ref[...],
                    preferred_element_type=jnp.float32) + ba_ref[...])
        s_exp = jnp.dot(h, vexp_ref[...], preferred_element_type=jnp.float32)
        mx = jnp.max(s_exp, axis=1, keepdims=True)
        e = jnp.exp(s_exp - mx)
        # every modality score is repeated L times along lanes -> divide by L
        denom = jnp.sum(e, axis=1, keepdims=True) * (1.0 / L)
        attn = e / denom                                    # softmax, expanded
        weighted = attn * slab                              # (Bp, M*L)
    else:
        weighted = slab                                     # single modality

    heads_raw = (jnp.dot(weighted, wheads_ref[...],
                         preferred_element_type=jnp.float32) + bheads_ref[...])

    # masked (lane-wise) log-softmax over the 2 label lanes; hazard in lane 0
    lane = lax.broadcasted_iota(jnp.int32, heads_raw.shape, 1)
    is_logit = jnp.logical_and(lane >= 1, lane < 3)
    masked = jnp.where(is_logit, heads_raw, -jnp.inf)
    lmx = jnp.max(masked, axis=1, keepdims=True)
    lse = lmx + jnp.log(jnp.sum(jnp.exp(masked - lmx), axis=1, keepdims=True))
    heads_ref[...] = jnp.where(
        lane == 0, heads_raw,
        jnp.where(is_logit, heads_raw - lse, 0.0))


def pallas_net_call(x_cat, packed, num_modalities, m_length):
    Bp = x_cat.shape[0]
    ML = num_modalities * m_length
    if num_modalities > 1:
        args = (x_cat, packed["w_proj"], packed["b_proj"],
                packed["wa"], packed["ba"], packed["v_exp"],
                packed["w_heads"], packed["b_heads"])
    else:
        args = (x_cat, packed["w_proj"], packed["b_proj"],
                packed["w_heads"], packed["b_heads"])

    kernel = functools.partial(_net_fused_kernel,
                               num_modalities=num_modalities,
                               m_length=m_length)
    reps, heads = pl.pallas_call(
        kernel,
        out_shape=(jax.ShapeDtypeStruct((Bp, ML), jnp.float32),
                   jax.ShapeDtypeStruct((Bp, HEADS_PAD), jnp.float32)),
        in_specs=[pl.BlockSpec(memory_space=pltpu.MemorySpace.VMEM)
                  for _ in args],
        out_specs=(pl.BlockSpec(memory_space=pltpu.MemorySpace.VMEM),
                   pl.BlockSpec(memory_space=pltpu.MemorySpace.VMEM)),
    )(*args)
    return reps, heads


# ----------------------------------------------------------------------------
# Parameter construction (deterministic, in-script) + one-time packing.
# ----------------------------------------------------------------------------
def init_params(key, modalities, m_length, input_modality_dim):
    params = {}
    keys = iter(jax.random.split(key, 64))

    def dense(din, dout):
        return {
            "w": 0.1 * jax.random.normal(next(keys), (din, dout), jnp.float32),
            "b": 0.01 * jax.random.normal(next(keys), (dout,), jnp.float32),
        }

    if "clinical" in modalities:
        emb_tables = [
            0.1 * jax.random.normal(next(keys), (CAT_VOCAB, EMB_DIM), jnp.float32)
            for _ in range(N_CAT_FEATURES)
        ]
        cont_dim = input_modality_dim["clinical"]
        proj = dense(N_CAT_FEATURES * EMB_DIM + cont_dim, m_length)
        params["clinical"] = {"embeddings": emb_tables, **proj}
    for mod in ("mRNA", "miRNA", "CNV"):
        if mod in modalities:
            params[mod] = dense(input_modality_dim[mod], m_length)

    if len(modalities) > 1:
        params["fusion"] = {
            "wa": 0.1 * jax.random.normal(next(keys), (m_length, m_length), jnp.float32),
            "ba": 0.01 * jax.random.normal(next(keys), (m_length,), jnp.float32),
            "va": 0.1 * jax.random.normal(next(keys), (m_length, 1), jnp.float32),
        }
    params["hazard"] = dense(m_length, 1)
    params["label"] = dense(m_length, 2)
    return params


def pack_params(params, modalities, m_length):
    """Pack per-modality / head weights into the fused, lane-dense layout.

    Done once outside the hot path.
    """
    M, L = len(modalities), m_length
    eff_dims = [params[mod]["w"].shape[0] for mod in modalities]
    K_total = sum(eff_dims)
    K_pad = max(LANE, _round_up(K_total, LANE))

    # block-diagonal projection weight (K_pad, M*L) + packed bias
    w_proj = jnp.zeros((K_pad, M * L), jnp.float32)
    b_list = []
    off = 0
    for m, mod in enumerate(modalities):
        w = params[mod]["w"]
        d = w.shape[0]
        w_proj = w_proj.at[off:off + d, m * L:(m + 1) * L].set(w)
        b_list.append(params[mod]["b"])
        off += d
    b_proj = jnp.concatenate(b_list).reshape(1, M * L)

    packed = {"w_proj": w_proj, "b_proj": b_proj,
              "k_total": K_total, "k_pad": K_pad}

    # fused hazard+label head weight (L, 128): col0=hazard, cols1:3=label
    w_heads_unit = jnp.zeros((L, HEADS_PAD), jnp.float32)
    w_heads_unit = w_heads_unit.at[:, 0:1].set(params["hazard"]["w"])
    w_heads_unit = w_heads_unit.at[:, 1:3].set(params["label"]["w"])
    b_heads = jnp.zeros((1, HEADS_PAD), jnp.float32)
    b_heads = b_heads.at[0, 0].set(params["hazard"]["b"][0])
    b_heads = b_heads.at[0, 1:3].set(params["label"]["b"])

    if M > 1:
        wa = params["fusion"]["wa"]
        ba = params["fusion"]["ba"]
        va = params["fusion"]["va"]                         # (L, 1)
        wa_big = jnp.zeros((M * L, M * L), jnp.float32)
        v_exp = jnp.zeros((M * L, M * L), jnp.float32)
        va_tile = jnp.tile(va.reshape(L, 1), (1, L))        # each col = va
        for m in range(M):
            sl = slice(m * L, (m + 1) * L)
            wa_big = wa_big.at[sl, sl].set(wa)
            v_exp = v_exp.at[sl, sl].set(va_tile)
        packed["wa"] = wa_big
        packed["ba"] = jnp.tile(ba.reshape(1, L), (1, M))
        packed["v_exp"] = v_exp
        # tiled head weight: matmul over the attn-weighted slab == the
        # attention-weighted sum over modalities followed by the heads
        packed["w_heads"] = jnp.tile(w_heads_unit, (M, 1))
    else:
        packed["w_heads"] = w_heads_unit
    packed["b_heads"] = b_heads
    return packed


# ----------------------------------------------------------------------------
# Forward pass (mirrors Net.forward). Embedding gather + input concat are
# XLA glue; everything else runs in the single Pallas kernel.
# ----------------------------------------------------------------------------
def net_forward(params, packed, x, modalities, m_length):
    feats = []
    for mod in modalities:
        if mod == "clinical":
            cat = x["clinical_categorical"]
            cont = x["clinical_continuous"].astype(jnp.float32)
            embs = [jnp.take(params["clinical"]["embeddings"][i], cat[:, i], axis=0)
                    for i in range(N_CAT_FEATURES)]
            feats.append(jnp.concatenate(embs + [cont], axis=1))
        else:
            feats.append(x[mod].astype(jnp.float32))
    x_cat = jnp.concatenate(feats, axis=1)                  # (B, K_total)

    B = x_cat.shape[0]
    Bp = _round_up(max(B, SUBLANE), SUBLANE)                # sublane-align batch
    x_cat = jnp.pad(x_cat, ((0, Bp - B), (0, packed["k_pad"] - x_cat.shape[1])))

    reps_slab, heads = pallas_net_call(x_cat, packed, len(modalities), m_length)

    representation = {mod: reps_slab[:B, m * m_length:(m + 1) * m_length]
                      for m, mod in enumerate(modalities)}
    hazard = heads[:B, 0:1]
    score = heads[:B, 1:3]
    return {"hazard": hazard, "score": score}, representation


# ----------------------------------------------------------------------------
# Pure-JAX reference (same math, un-fused) for a loose numerical check.
# ----------------------------------------------------------------------------
def net_forward_ref(params, x, modalities, m_length):
    reps = {}
    for mod in modalities:
        if mod == "clinical":
            cat = x["clinical_categorical"]
            cont = x["clinical_continuous"]
            embs = [jnp.take(params["clinical"]["embeddings"][i], cat[:, i], axis=0)
                    for i in range(N_CAT_FEATURES)]
            feat = jnp.concatenate(embs + [cont], axis=1)
        else:
            feat = x[mod]
        reps[mod] = jnp.tanh(feat @ params[mod]["w"] + params[mod]["b"])
    if len(modalities) > 1:
        wa, ba, va = (params["fusion"]["wa"], params["fusion"]["ba"],
                      params["fusion"]["va"])
        scores = jnp.concatenate(
            [jnp.tanh(reps[mod] @ wa + ba) @ va for mod in modalities], axis=1)
        attn = jax.nn.softmax(scores, axis=1)
        fused = sum(attn[:, m:m + 1] * reps[mod]
                    for m, mod in enumerate(modalities))
    else:
        fused = reps[modalities[0]]
    hazard = fused @ params["hazard"]["w"] + params["hazard"]["b"]
    score = jax.nn.log_softmax(
        fused @ params["label"]["w"] + params["label"]["b"], axis=1)
    return {"hazard": hazard, "score": score}, reps


# ----------------------------------------------------------------------------
# Main
# ----------------------------------------------------------------------------
if __name__ == "__main__":
    modalities = ["clinical", "mRNA", "miRNA", "CNV"]
    m_length = 32
    batch = 4
    # small, in-script analogue of the default modality dims
    input_modality_dim = {"clinical": 4, "mRNA": 158, "miRNA": 74, "CNV": 271}

    root = jax.random.PRNGKey(0)
    k_param, k_cat, k_cont, k_mrna, k_mirna, k_cnv = jax.random.split(root, 6)

    params = init_params(k_param, modalities, m_length, input_modality_dim)
    packed = pack_params(params, modalities, m_length)

    x = {
        "clinical_categorical": jax.random.randint(
            k_cat, (batch, N_CAT_FEATURES), 0, CAT_VOCAB, dtype=jnp.int32),
        "clinical_continuous": jax.random.normal(
            k_cont, (batch, input_modality_dim["clinical"]), jnp.float32),
        "mRNA": jax.random.normal(
            k_mrna, (batch, input_modality_dim["mRNA"]), jnp.float32),
        "miRNA": jax.random.normal(
            k_mirna, (batch, input_modality_dim["miRNA"]), jnp.float32),
        "CNV": jax.random.normal(
            k_cnv, (batch, input_modality_dim["CNV"]), jnp.float32),
    }

    outputs, representation = net_forward(params, packed, x, modalities, m_length)
    jax.block_until_ready(outputs)
    jax.block_until_ready(representation)

    assert outputs["hazard"].shape == (batch, 1)
    assert outputs["score"].shape == (batch, 2)
    for m in modalities:
        assert representation[m].shape == (batch, m_length)

    # loose tolerance: TPU matmul default precision differs slightly between
    # the fused MXU path and the XLA reference.
    ref_out, ref_reps = net_forward_ref(params, x, modalities, m_length)
    np.testing.assert_allclose(np.asarray(outputs["hazard"]),
                               np.asarray(ref_out["hazard"]),
                               rtol=5e-2, atol=5e-2)
    np.testing.assert_allclose(np.asarray(outputs["score"]),
                               np.asarray(ref_out["score"]),
                               rtol=5e-2, atol=5e-2)
    for m in modalities:
        np.testing.assert_allclose(np.asarray(representation[m]),
                                   np.asarray(ref_reps[m]),
                                   rtol=5e-2, atol=5e-2)

    print("KERNEL_OK")
</pallas_src>

<mosaic_0001>
module attributes {stable_mosaic.version = 11 : i64} {
  func.func @_net_fused_kernel(%arg0: memref<8x640xf32, #tpu.memory_space<vmem>>, %arg1: memref<640x128xf32, #tpu.memory_space<vmem>>, %arg2: memref<1x128xf32, #tpu.memory_space<vmem>>, %arg3: memref<128x128xf32, #tpu.memory_space<vmem>>, %arg4: memref<1x128xf32, #tpu.memory_space<vmem>>, %arg5: memref<128x128xf32, #tpu.memory_space<vmem>>, %arg6: memref<128x128xf32, #tpu.memory_space<vmem>>, %arg7: memref<1x128xf32, #tpu.memory_space<vmem>>, %arg8: memref<8x128xf32, #tpu.memory_space<vmem>>, %arg9: memref<8x128xf32, #tpu.memory_space<vmem>>) attributes {dimension_semantics = [], scalar_prefetch = 0 : i64, scratch_operands = 0 : i64, tpu.core_type = #tpu.core_type<tc>} {
    %c0 = arith.constant 0 : index
    %c0_0 = arith.constant 0 : index
    %0 = vector.load %arg0[%c0, %c0_0] : memref<8x640xf32, #tpu.memory_space<vmem>>, vector<8x640xf32>
    %c0_1 = arith.constant 0 : index
    %c0_2 = arith.constant 0 : index
    %1 = vector.load %arg1[%c0_1, %c0_2] : memref<640x128xf32, #tpu.memory_space<vmem>>, vector<640x128xf32>
    %cst = arith.constant dense<0.000000e+00> : vector<8x128xf32>
    %2 = tpu.matmul %0, %1, %cst {dimension_numbers = #tpu.dot_dimension_numbers<[1], [0], [0], [1], [0, 0, 1, 1], [], []>} : vector<8x640xf32>, vector<640x128xf32>, vector<8x128xf32> -> vector<8x128xf32>
    %c0_3 = arith.constant 0 : index
    %c0_4 = arith.constant 0 : index
    %3 = vector.load %arg2[%c0_3, %c0_4] : memref<1x128xf32, #tpu.memory_space<vmem>>, vector<1x128xf32>
    %4 = vector.broadcast %3 : vector<1x128xf32> to vector<8x128xf32>
    %5 = arith.addf %2, %4 : vector<8x128xf32>
    %6 = math.tanh %5 : vector<8x128xf32>
    %c0_5 = arith.constant 0 : index
    %c0_6 = arith.constant 0 : index
    %7 = vector.load %arg8[%c0_5, %c0_6] : memref<8x128xf32, #tpu.memory_space<vmem>>, vector<8x128xf32>
    tpu.vector_store %arg8[%c0_5, %c0_6], %6 {strides = array<i32>} : memref<8x128xf32, #tpu.memory_space<vmem>>, vector<8x128xf32>,
    %c0_7 = arith.constant 0 : index
    %c0_8 = arith.constant 0 : index
    %8 = vector.load %arg3[%c0_7, %c0_8] : memref<128x128xf32, #tpu.memory_space<vmem>>, vector<128x128xf32>
    %cst_9 = arith.constant dense<0.000000e+00> : vector<8x128xf32>
    %9 = tpu.matmul %6, %8, %cst_9 {dimension_numbers = #tpu.dot_dimension_numbers<[1], [0], [0], [1], [0, 0, 1, 1], [], []>} : vector<8x128xf32>, vector<128x128xf32>, vector<8x128xf32> -> vector<8x128xf32>
    %c0_10 = arith.constant 0 : index
    %c0_11 = arith.constant 0 : index
    %10 = vector.load %arg4[%c0_10, %c0_11] : memref<1x128xf32, #tpu.memory_space<vmem>>, vector<1x128xf32>
    %11 = vector.broadcast %10 : vector<1x128xf32> to vector<8x128xf32>
    %12 = arith.addf %9, %11 : vector<8x128xf32>
    %13 = math.tanh %12 : vector<8x128xf32>
    %c0_12 = arith.constant 0 : index
    %c0_13 = arith.constant 0 : index
    %14 = vector.load %arg5[%c0_12, %c0_13] : memref<128x128xf32, #tpu.memory_space<vmem>>, vector<128x128xf32>
    %cst_14 = arith.constant dense<0.000000e+00> : vector<8x128xf32>
    %15 = tpu.matmul %13, %14, %cst_14 {dimension_numbers = #tpu.dot_dimension_numbers<[1], [0], [0], [1], [0, 0, 1, 1], [], []>} : vector<8x128xf32>, vector<128x128xf32>, vector<8x128xf32> -> vector<8x128xf32>
    %cst_15 = arith.constant dense<0xFF800000> : vector<8xf32>
    %16 = vector.multi_reduction <maximumf>, %15, %cst_15 [1] : vector<8x128xf32> to vector<8xf32>
    %17 = vector.shape_cast %16 : vector<8xf32> to vector<8x1xf32>
    %18 = vector.broadcast %17 : vector<8x1xf32> to vector<8x128xf32>
    %19 = arith.subf %15, %18 : vector<8x128xf32>
    %20 = math.exp %19 : vector<8x128xf32>
    %cst_16 = arith.constant dense<0.000000e+00> : vector<8xf32>
    %21 = vector.multi_reduction <add>, %20, %cst_16 [1] : vector<8x128xf32> to vector<8xf32>
    %22 = vector.shape_cast %21 : vector<8xf32> to vector<8x1xf32>
    %cst_17 = arith.constant 3.125000e-02 : f32
    %23 = vector.broadcast %cst_17 : f32 to vector<8x1xf32>
    %24 = arith.mulf %22, %23 : vector<8x1xf32>
    %25 = vector.broadcast %24 : vector<8x1xf32> to vector<8x128xf32>
    %26 = arith.divf %20, %25 : vector<8x128xf32>
    %27 = arith.mulf %26, %6 : vector<8x128xf32>
    %c0_18 = arith.constant 0 : index
    %c0_19 = arith.constant 0 : index
    %28 = vector.load %arg6[%c0_18, %c0_19] : memref<128x128xf32, #tpu.memory_space<vmem>>, vector<128x128xf32>
    %cst_20 = arith.constant dense<0.000000e+00> : vector<8x128xf32>
    %29 = tpu.matmul %27, %28, %cst_20 {dimension_numbers = #tpu.dot_dimension_numbers<[1], [0], [0], [1], [0, 0, 1, 1], [], []>} : vector<8x128xf32>, vector<128x128xf32>, vector<8x128xf32> -> vector<8x128xf32>
    %c0_21 = arith.constant 0 : index
    %c0_22 = arith.constant 0 : index
    %30 = vector.load %arg7[%c0_21, %c0_22] : memref<1x128xf32, #tpu.memory_space<vmem>>, vector<1x128xf32>
    %31 = vector.broadcast %30 : vector<1x128xf32> to vector<8x128xf32>
    %32 = arith.addf %29, %31 : vector<8x128xf32>
    %33 = tpu.iota {dimensions = array<i32: 1>} : vector<8x128xi32>
    %c1_i32 = arith.constant 1 : i32
    %34 = vector.broadcast %c1_i32 : i32 to vector<8x128xi32>
    %35 = arith.cmpi sge, %33, %34 : vector<8x128xi32>
    %c3_i32 = arith.constant 3 : i32
    %36 = vector.broadcast %c3_i32 : i32 to vector<8x128xi32>
    %37 = arith.cmpi slt, %33, %36 : vector<8x128xi32>
    %38 = arith.andi %35, %37 : vector<8x128xi1>
    %cst_23 = arith.constant 0xFF800000 : f32
    %39 = vector.broadcast %cst_23 : f32 to vector<8x128xf32>
    %40 = arith.select %38, %32, %39 : vector<8x128xi1>, vector<8x128xf32>
    %cst_24 = arith.constant dense<0xFF800000> : vector<8xf32>
    %41 = vector.multi_reduction <maximumf>, %40, %cst_24 [1] : vector<8x128xf32> to vector<8xf32>
    %42 = vector.shape_cast %41 : vector<8xf32> to vector<8x1xf32>
    %43 = vector.broadcast %42 : vector<8x1xf32> to vector<8x128xf32>
    %44 = arith.subf %40, %43 : vector<8x128xf32>
    %45 = math.exp %44 : vector<8x128xf32>
    %cst_25 = arith.constant dense<0.000000e+00> : vector<8xf32>
    %46 = vector.multi_reduction <add>, %45, %cst_25 [1] : vector<8x128xf32> to vector<8xf32>
    %47 = vector.shape_cast %46 : vector<8xf32> to vector<8x1xf32>
    %48 = math.log %47 : vector<8x1xf32>
    %49 = arith.addf %42, %48 : vector<8x1xf32>
    %c0_i32 = arith.constant 0 : i32
    %50 = vector.broadcast %c0_i32 : i32 to vector<8x128xi32>
    %51 = arith.cmpi eq, %33, %50 : vector<8x128xi32>
    %52 = vector.broadcast %49 : vector<8x1xf32> to vector<8x128xf32>
    %53 = arith.subf %32, %52 : vector<8x128xf32>
    %cst_26 = arith.constant 0.000000e+00 : f32
    %54 = vector.broadcast %cst_26 : f32 to vector<8x128xf32>
    %55 = arith.select %38, %53, %54 : vector<8x128xi1>, vector<8x128xf32>
    %56 = arith.select %51, %32, %55 : vector<8x128xi1>, vector<8x128xf32>
    %c0_27 = arith.constant 0 : index
    %c0_28 = arith.constant 0 : index
    %57 = vector.load %arg9[%c0_27, %c0_28] : memref<8x128xf32, #tpu.memory_space<vmem>>, vector<8x128xf32>
    tpu.vector_store %arg9[%c0_27, %c0_28], %56 {strides = array<i32>} : memref<8x128xf32, #tpu.memory_space<vmem>>, vector<8x128xf32>,
    return
  }
}

</mosaic_0001>

<bundles_post_ra>
// kernel: tpu_custom_call.1
= control target key start
LH: loop header
LB: loop body
LE: loop exit
PB: predicated region body
PF: predicated region fallthrough
CT: control target
= control target key end

     0   :  { %15 = vsyncpa [#allocation3], 0  ;;  %s1588_s0 = inlined_call_operand.hbm [shape: f32[8,640], index: 0, kind: input, shape index: {}]   ;;  %s1589_s1 = inlined_call_operand.hbm [shape: f32[640,128], index: 1, kind: input, shape index: {}]   ;;  %s1590_s2 = inlined_call_operand.vmem [shape: f32[1,128], index: 2, kind: input, shape index: {}]   ;;  %s1591_s3 = inlined_call_operand.hbm [shape: f32[128,128], index: 3, kind: input, shape index: {}]   ;;  %s1592_s4 = inlined_call_operand.vmem [shape: f32[1,128], index: 4, kind: input, shape index: {}]   ;;  %s1593_s5 = inlined_call_operand.hbm [shape: f32[128,128], index: 5, kind: input, shape index: {}]   ;;  %s1594_s6 = inlined_call_operand.hbm [shape: f32[128,128], index: 6, kind: input, shape index: {}]   ;;  %s1595_s7 = inlined_call_operand.vmem [shape: f32[1,128], index: 7, kind: input, shape index: {}]   ;;  %s1596_s8 = inlined_call_operand.hbm [shape: f32[8,128], index: 8, kind: output, shape index: {0}]   ;;  %s1597_s9 = inlined_call_operand.hbm [shape: f32[8,128], index: 9, kind: output, shape index: {1}]  }
   0x1   :  { %16 = vsyncpa [#allocation6], 0 }
   0x2   :  { %17 = vsyncpa [#allocation9], 0 }
   0x3   :  { %18 = vsyncpa [#allocation4], 0 }
   0x4   :  { %19 = vsyncpa [#allocation13], 0  ;;  %s1368_s30 = smov [#allocation5]   ;;  %s1204_s13 = scalar_lea.hbm %s1589_s1, 10240 }
   0x5   :  { %s35_s10 = sshll.u32 %s1368_s30, 4  ;;  %p1205_p0 = scmp.ne.s32.totalorder %s1589_s1, %s1204_s13  ;;  %s36_s10 = int_to_ptr.vmem [resolvable:$true] %s35_s10 }
   0x6   :  { %p1208_p1 = scmp.lt.u32.totalorder %s1204_s13, %s1589_s1 }
   0x8   :  { %p1210_p2 = pnand %p1208_p1, %p1205_p0 }
   0xa   :  { %1213 = shalt.err (!%p1210_p2)
}
   0xb   :  { %s1214_s18 = scalar_lea.vmem %s36_s10, 10240  ;;  %p1219_p4 = scmp.lt.s32.totalorder %s36_s10, %s36_s10 }
   0xc   :  { %p1215_p3 = scmp.ne.s32.totalorder %s36_s10, %s1214_s18  ;;  %p1220_p5 = scmp.lt.s32.totalorder %s1214_s18, %s1214_s18 }
   0xe   :  { %p1221_p6 = por %p1220_p5, %p1219_p4 }
  0x10   :  { %p1222_p7 = pnand %p1221_p6, %p1215_p3 }
  0x12   :  { %1225 = shalt.err (!%p1222_p7)
}
  0x13   :  { %s1369_s19 = smov 128   ;;  %s1370_s20 = smov 8  }
  0x14   :  { %41 = dma.hbm_to_vmem [thread:$0]  %s1589_s1, 10240, %s36_s10, [#allocation6], %s1369_s19, %s1369_s19, %s1370_s20  }
  0x15   :  { %s1371_s23 = smov [#allocation8]   ;;  %s1372_s25 = smov [#allocation2]  }
  0x16   :  { %s63_s24 = sshll.u32 %s1371_s23, 4  ;;  %s26_s26 = sshll.u32 %s1372_s25, 4  ;;  %s64_s24 = int_to_ptr.vmem [resolvable:$true] %s63_s24  ;;  %s27_s26 = int_to_ptr.vmem [resolvable:$true] %s26_s26 }
  0x17   :  { %s1226_s29 = scalar_lea.hbm %s1593_s5, 2048 }
  0x18   :  { %p1227_p8 = scmp.ne.s32.totalorder %s1593_s5, %s1226_s29  ;;  %p1230_p9 = scmp.lt.u32.totalorder %s1226_s29, %s1593_s5 }
  0x1a   :  { %p1232_p10 = pnand %p1230_p9, %p1227_p8 }
  0x1c   :  { %1235 = shalt.err (!%p1232_p10)
}
  0x1d   :  { %s1236_s1 = scalar_lea.vmem %s64_s24, 2048  ;;  %p1241_p12 = scmp.lt.s32.totalorder %s64_s24, %s64_s24 }
  0x1e   :  { %p1237_p11 = scmp.ne.s32.totalorder %s64_s24, %s1236_s1  ;;  %p1242_p13 = scmp.lt.s32.totalorder %s1236_s1, %s1236_s1 }
  0x20   :  { %p1243_p0 = por %p1242_p13, %p1241_p12 }
  0x22   :  { %p1244_p1 = pnand %p1243_p0, %p1237_p11 }
  0x24   :  { %1247 = shalt.err (!%p1244_p1)
}
  0x25   :  { %69 = dma.hbm_to_vmem [thread:$0]  %s1593_s5, 2048, %s64_s24, [#allocation9], %s1369_s19, %s1369_s19, %s1370_s20  }
  0x26   :  { %s1248_s17 = scalar_lea.hbm %s1588_s0, 640 }
  0x27   :  { %p1249_p2 = scmp.ne.s32.totalorder %s1588_s0, %s1248_s17  ;;  %p1252_p3 = scmp.lt.u32.totalorder %s1248_s17, %s1588_s0 }
  0x29   :  { %p1254_p4 = pnand %p1252_p3, %p1249_p2 }
  0x2b   :  { %1257 = shalt.err (!%p1254_p4)
}
  0x2c   :  { %s1258_s25 = scalar_lea.vmem %s27_s26, 640  ;;  %p1263_p6 = scmp.lt.s32.totalorder %s27_s26, %s27_s26 }
  0x2d   :  { %p1259_p5 = scmp.ne.s32.totalorder %s27_s26, %s1258_s25  ;;  %p1264_p7 = scmp.lt.s32.totalorder %s1258_s25, %s1258_s25 }
  0x2f   :  { %p1265_p8 = por %p1264_p7, %p1263_p6 }
  0x31   :  { %p1266_p9 = pnand %p1265_p8, %p1259_p5 }
  0x33   :  { %1269 = shalt.err (!%p1266_p9)
}
  0x34   :  { %29 = dma.hbm_to_vmem [thread:$0]  %s1588_s0, 640, %s27_s26, [#allocation3]  }
  0x35   :  { %s1373_s27 = smov [#allocation7]   ;;  %s1374_s29 = smov [#allocation10]  }
  0x36   :  { %s49_s28 = sshll.u32 %s1373_s27, 4  ;;  %s75_s30 = sshll.u32 %s1374_s29, 4  ;;  %s50_s28 = int_to_ptr.vmem [resolvable:$true] %s49_s28  ;;  %s76_s30 = int_to_ptr.vmem [resolvable:$true] %s75_s30 }
  0x37   :  { %s1270_s13 = scalar_lea.hbm %s1591_s3, 2048 }
  0x38   :  { %p1271_p10 = scmp.ne.s32.totalorder %s1591_s3, %s1270_s13  ;;  %p1274_p11 = scmp.lt.u32.totalorder %s1270_s13, %s1591_s3 }
  0x3a   :  { %p1276_p12 = pnand %p1274_p11, %p1271_p10 }
  0x3c   :  { %1279 = shalt.err (!%p1276_p12)
}
  0x3d   :  { %s1280_s0 = scalar_lea.vmem %s50_s28, 2048  ;;  %p1285_p0 = scmp.lt.s32.totalorder %s50_s28, %s50_s28 }
  0x3e   :  { %p1281_p13 = scmp.ne.s32.totalorder %s50_s28, %s1280_s0  ;;  %p1286_p1 = scmp.lt.s32.totalorder %s1280_s0, %s1280_s0 }
  0x40   :  { %p1287_p2 = por %p1286_p1, %p1285_p0 }
  0x42   :  { %p1288_p3 = pnand %p1287_p2, %p1281_p13 }
  0x44   :  { %1291 = shalt.err (!%p1288_p3)
}
  0x45   :  { %55 = dma.hbm_to_vmem [thread:$0]  %s1591_s3, 2048, %s50_s28, [#allocation6], %s1369_s19, %s1369_s19, %s1370_s20  }
  0x46   :  { %s1292_s21 = scalar_lea.hbm %s1594_s6, 2048 }
  0x47   :  { %p1293_p4 = scmp.ne.s32.totalorder %s1594_s6, %s1292_s21  ;;  %p1296_p5 = scmp.lt.u32.totalorder %s1292_s21, %s1594_s6 }
  0x49   :  { %p1298_p6 = pnand %p1296_p5, %p1293_p4 }
  0x4b   :  { %1301 = shalt.err (!%p1298_p6)
}
  0x4c   :  { %s1302_s24 = scalar_lea.vmem %s76_s30, 2048  ;;  %p1307_p8 = scmp.lt.s32.totalorder %s76_s30, %s76_s30 }
  0x4d   :  { %p1303_p7 = scmp.ne.s32.totalorder %s76_s30, %s1302_s24  ;;  %p1308_p9 = scmp.lt.s32.totalorder %s1302_s24, %s1302_s24 }
  0x4f   :  { %p1309_p10 = por %p1308_p9, %p1307_p8 }
  0x51   :  { %p1310_p11 = pnand %p1309_p10, %p1303_p7 }
  0x53   :  { %1313 = shalt.err (!%p1310_p11)
}
  0x54   :  { %81 = dma.hbm_to_vmem [thread:$0]  %s1594_s6, 2048, %s76_s30, [#allocation9], %s1369_s19, %s1369_s19, %s1370_s20  }
  0x55   :  { %1358 = dma.done.wait [#allocation3], 640  }
  0x56   :  { %1359 = vsyncadd [#allocation3], 4294966656 }
  0x57   :  { %1360 = dma.done.wait [#allocation6], 12288  }
  0x58   :  { %1361 = vsyncadd [#allocation6], 4294955008 }
  0x59   :  { %1362 = dma.done.wait [#allocation9], 4096  }
  0x5a   :  { %1363 = vsyncadd [#allocation9], 4294963200  ;;  %v120_v0 = vld [vmem:[#allocation5 + $0x80] sm:$0xff]  ;;  %v121_v1 = vld [vmem:[#allocation5 + $0x88] sm:$0xff]  ;;  %vm1376_vm0 = vmmov 0   ;;  %s1378_s29 = smov [#allocation11]  }
  0x5b   :  { %v104_v2 = vld [vmem:[#allocation5] sm:$0xff]  ;;  %v1020_v3 = vpack.c.bf16 %v121_v1, %v120_v0  ;;  %v105_v4 = vld [vmem:[#allocation5 + $0x8] sm:$0xff]  ;;  %v122_v11 = vld [vmem:[#allocation5 + $0x90] sm:$0xff]  ;;  %s714_s30 = sshll.u32 %s1378_s29, 4  ;;  %s715_s30 = int_to_ptr.vmem [resolvable:$true] %s714_s30 }
  0x5c   :  { %v152_v5 = vld [vmem:[#allocation5 + $0x180] sm:$0xff]  ;;  %v153_v6 = vld [vmem:[#allocation5 + $0x188] sm:$0xff]  ;;  %v1022_v7 = vpack.c.bf16 %v105_v4, %v104_v2  ;;  %v123_v13 = vld [vmem:[#allocation5 + $0x98] sm:$0xff]  ;;  %p1319_p13 = scmp.lt.s32.totalorder %s715_s30, %s715_s30 }
  0x5d   :  { %v1052_v8 = vpack.c.bf16 %v153_v6, %v152_v5  ;;  %v136_v9 = vld [vmem:[#allocation5 + $0x100] sm:$0xff]  ;;  %v137_v10 = vld [vmem:[#allocation5 + $0x108] sm:$0xff]  ;;  %1021 = vmatprep.subr.bf16.mxu0 %v1020_v3  ;;  %v106_v14 = vld [vmem:[#allocation5 + $0x10] sm:$0xff]  ;;  %v1024_v16 = vpack.c.bf16 %v123_v13, %v122_v11 }
  0x5e   :  { %v1054_v12 = vpack.c.bf16 %v137_v10, %v136_v9  ;;  %v107_v15 = vld [vmem:[#allocation5 + $0x18] sm:$0xff]  ;;  %1023 = vmatpush3.bf16.msra.mxu0 %v1022_v7  ;;  %v154_v18 = vld [vmem:[#allocation5 + $0x190] sm:$0xff]  ;;  %v124_v23 = vld [vmem:[#allocation5 + $0xa0] sm:$0xff] }
  0x5f   :  { %1053 = vmatprep.subr.bf16.mxu1 %v1052_v8  ;;  %v1026_v17 = vpack.c.bf16 %v107_v15, %v106_v14  ;;  %v155_v19 = vld [vmem:[#allocation5 + $0x198] sm:$0xff]  ;;  %v138_v20 = vld [vmem:[#allocation5 + $0x110] sm:$0xff]  ;;  %v125_v24 = vld [vmem:[#allocation5 + $0xa8] sm:$0xff]  ;;  %1025 = vmatprep.subr.bf16.mxu0 %v1024_v16 }
  0x60   :  { %1055 = vmatpush3.bf16.msra.mxu1 %v1054_v12  ;;  %v1056_v21 = vpack.c.bf16 %v155_v19, %v154_v18  ;;  %v139_v22 = vld [vmem:[#allocation5 + $0x118] sm:$0xff]  ;;  %v1028_v26 = vpack.c.bf16 %v125_v24, %v124_v23  ;;  %v108_v27 = vld [vmem:[#allocation5 + $0x20] sm:$0xff]  ;;  %v109_v28 = vld [vmem:[#allocation5 + $0x28] sm:$0xff] }
  0x61   :  { %v1058_v25 = vpack.c.bf16 %v139_v22, %v138_v20  ;;  %v156_v29 = vld [vmem:[#allocation5 + $0x1a0] sm:$0xff]  ;;  %v157_v30 = vld [vmem:[#allocation5 + $0x1a8] sm:$0xff]  ;;  %v1030_v33 = vpack.c.bf16 %v109_v28, %v108_v27  ;;  %v126_v35 = vld [vmem:[#allocation5 + $0xb0] sm:$0xff] }
  0x62   :  { %1057 = vmatprep.subr.bf16.mxu1 %v1056_v21  ;;  %v140_v31 = vld [vmem:[#allocation5 + $0x120] sm:$0xff]  ;;  %v141_v32 = vld [vmem:[#allocation5 + $0x128] sm:$0xff]  ;;  %1027 = vmatpush3.bf16.msra.mxu0 %v1026_v17  ;;  %v1060_v34 = vpack.c.bf16 %v157_v30, %v156_v29  ;;  %v127_v36 = vld [vmem:[#allocation5 + $0xb8] sm:$0xff] }
  0x63   :  { %v110_v37 = vld [vmem:[#allocation5 + $0x30] sm:$0xff]  ;;  %1029 = vmatprep.subr.bf16.mxu0 %v1028_v26  ;;  %v1062_v38 = vpack.c.bf16 %v141_v32, %v140_v31  ;;  %v1032_v39 = vpack.c.bf16 %v127_v36, %v126_v35  ;;  %v111_v40 = vld [vmem:[#allocation5 + $0x38] sm:$0xff]  ;;  %v128_v46 = vld [vmem:[#allocation5 + $0xc0] sm:$0xff] }
  0x64   :  { %1059 = vmatpush3.bf16.msra.mxu1 %v1058_v25  ;;  %v158_v41 = vld [vmem:[#allocation5 + $0x1b0] sm:$0xff]  ;;  %v159_v42 = vld [vmem:[#allocation5 + $0x1b8] sm:$0xff]  ;;  %v129_v47 = vld [vmem:[#allocation5 + $0xc8] sm:$0xff]  ;;  %v1034_v48 = vpack.c.bf16 %v111_v40, %v110_v37 }
  0x65   :  { %1061 = vmatprep.subr.bf16.mxu1 %v1060_v34  ;;  %v1064_v43 = vpack.c.bf16 %v159_v42, %v158_v41  ;;  %v142_v44 = vld [vmem:[#allocation5 + $0x130] sm:$0xff]  ;;  %v143_v45 = vld [vmem:[#allocation5 + $0x138] sm:$0xff]  ;;  %v160_v49 = vld [vmem:[#allocation5 + $0x1c0] sm:$0xff]  ;;  %v1036_v52 = vpack.c.bf16 %v129_v47, %v128_v46 }
  0x66   :  { %1031 = vmatpush3.bf16.msra.mxu0 %v1030_v33  ;;  %v161_v50 = vld [vmem:[#allocation5 + $0x1c8] sm:$0xff]  ;;  %v1066_v51 = vpack.c.bf16 %v143_v45, %v142_v44  ;;  %v112_v53 = vld [vmem:[#allocation5 + $0x40] sm:$0xff]  ;;  %v130_v58 = vld [vmem:[#allocation5 + $0xd0] sm:$0xff]  ;;  %v1377_v45 = vmov 0.0  }
  0x67   :  { %1033 = vmatprep.subr.bf16.mxu0 %v1032_v39  ;;  %v113_v54 = vld [vmem:[#allocation5 + $0x48] sm:$0xff]  ;;  %v144_v55 = vld [vmem:[#allocation5 + $0x140] sm:$0xff]  ;;  %v1068_v56 = vpack.c.bf16 %v161_v50, %v160_v49  ;;  %v131_v59 = vld [vmem:[#allocation5 + $0xd8] sm:$0xff] }
  0x68   :  { %1063 = vmatpush3.bf16.msra.mxu1 %v1062_v38  ;;  %v145_v57 = vld [vmem:[#allocation5 + $0x148] sm:$0xff]  ;;  %v162_v60 = vld [vmem:[#allocation5 + $0x1d0] sm:$0xff]  ;;  %v163_v61 = vld [vmem:[#allocation5 + $0x1d8] sm:$0xff]  ;;  %v1038_v62 = vpack.c.bf16 %v113_v54, %v112_v53  ;;  %v1040_v0 = vpack.c.bf16 %v131_v59, %v130_v58  ;;  %v1375_v38 = vmov 0.0|0.0  }
  0x69   :  { %1065 = vmatprep.subr.bf16.mxu1 %v1064_v43  ;;  %v1070_v63 = vpack.c.bf16 %v145_v57, %v144_v55  ;;  %v114_v1 = vld [vmem:[#allocation5 + $0x50] sm:$0xff]  ;;  %v115_v2 = vld [vmem:[#allocation5 + $0x58] sm:$0xff]  ;;  %v1072_v4 = vpack.c.bf16 %v163_v61, %v162_v60  ;;  %v132_v6 = vld [vmem:[#allocation5 + $0xe0] sm:$0xff] }
  0x6a   :  { %1035 = vmatpush3.bf16.msra.mxu0 %v1034_v48  ;;  %v146_v3 = vld [vmem:[#allocation5 + $0x150] sm:$0xff]  ;;  %v147_v5 = vld [vmem:[#allocation5 + $0x158] sm:$0xff]  ;;  %v133_v7 = vld [vmem:[#allocation5 + $0xe8] sm:$0xff]  ;;  %v1042_v10 = vpack.c.bf16 %v115_v2, %v114_v1 }
  0x6b   :  { %1037 = vmatprep.subr.bf16.mxu0 %v1036_v52  ;;  %v164_v8 = vld [vmem:[#allocation5 + $0x1e0] sm:$0xff]  ;;  %v165_v9 = vld [vmem:[#allocation5 + $0x1e8] sm:$0xff]  ;;  %v1074_v13 = vpack.c.bf16 %v147_v5, %v146_v3  ;;  %v1044_v14 = vpack.c.bf16 %v133_v7, %v132_v6  ;;  %v134_v19 = vld [vmem:[#allocation5 + $0xf0] sm:$0xff] }
  0x6c   :  { %1067 = vmatpush3.bf16.msra.mxu1 %v1066_v51  ;;  %v116_v11 = vld [vmem:[#allocation5 + $0x60] sm:$0xff]  ;;  %v117_v15 = vld [vmem:[#allocation5 + $0x68] sm:$0xff]  ;;  %v1076_v18 = vpack.c.bf16 %v165_v9, %v164_v8  ;;  %v135_v20 = vld [vmem:[#allocation5 + $0xf8] sm:$0xff] }
  0x6d   :  { %1069 = vmatprep.subr.bf16.mxu1 %v1068_v56  ;;  %v100_v12 = vld [vmem:[#allocation2 + $0x8] sm:$0xff]  ;;  %v149_v17 = vld [vmem:[#allocation5 + $0x168] sm:$0xff]  ;;  %v102_v21 = vld [vmem:[#allocation2 + $0x18] sm:$0xff]  ;;  %v1046_v24 = vpack.c.bf16 %v117_v15, %v116_v11  ;;  %v1048_v26 = vpack.c.bf16 %v135_v20, %v134_v19 }
  0x6e   :  { %1039 = vmatpush3.bf16.msra.mxu0 %v1038_v62  ;;  %v148_v16 = vld [vmem:[#allocation5 + $0x160] sm:$0xff]  ;;  %255 = vmatprep.mubr.f32.mxu0 %v100_v12  ;;  %v166_v22 = vld [vmem:[#allocation5 + $0x1f0] sm:$0xff]  ;;  %v167_v23 = vld [vmem:[#allocation5 + $0x1f8] sm:$0xff] }
  0x6f   :  { %1041 = vmatprep.subr.bf16.mxu0 %v1040_v0  ;;  %325 = vmatprep.mubr.f32.mxu1 %v102_v21  ;;  %v1078_v25 = vpack.c.bf16 %v149_v17, %v148_v16  ;;  %v118_v27 = vld [vmem:[#allocation5 + $0x70] sm:$0xff]  ;;  %v119_v28 = vld [vmem:[#allocation5 + $0x78] sm:$0xff]  ;;  %v1080_v29 = vpack.c.bf16 %v167_v23, %v166_v22  ;;  %v168_v34 = vld [vmem:[#allocation5 + $0x200] sm:$0xff] }
  0x70   :  { %1071 = vmatpush3.bf16.msra.mxu1 %v1070_v63  ;;  %v150_v30 = vld [vmem:[#allocation5 + $0x170] sm:$0xff]  ;;  %v151_v31 = vld [vmem:[#allocation5 + $0x178] sm:$0xff]  ;;  %v1050_v32 = vpack.c.bf16 %v119_v28, %v118_v27  ;;  %v169_v35 = vld [vmem:[#allocation5 + $0x208] sm:$0xff] }
  0x71   :  { %1073 = vmatprep.subr.bf16.mxu1 %v1072_v4  ;;  %v1082_v33 = vpack.c.bf16 %v151_v31, %v150_v30  ;;  %v99_v36 = vld [vmem:[#allocation2] sm:$0xff]  ;;  %v1085_v37 = vpack.c.bf16 %v169_v35, %v168_v34  ;;  %v101_v39 = vld [vmem:[#allocation2 + $0x10] sm:$0xff]  ;;  %v170_v40 = vld [vmem:[#allocation5 + $0x210] sm:$0xff] }
  0x72   :  { %1043 = vmatpush3.bf16.msra.mxu0 %v1042_v10  ;;  %v171_v41 = vld [vmem:[#allocation5 + $0x218] sm:$0xff]  ;;  %v172_v43 = vld [vmem:[#allocation5 + $0x220] sm:$0xff]  ;;  %v173_v44 = vld [vmem:[#allocation5 + $0x228] sm:$0xff] }
  0x73   :  { %1045 = vmatprep.subr.bf16.mxu0 %v1044_v14  ;;  %v1088_v42 = vpack.c.bf16 %v171_v41, %v170_v40  ;;  %v1091_v46 = vpack.c.bf16 %v173_v44, %v172_v43  ;;  %v174_v47 = vld [vmem:[#allocation5 + $0x230] sm:$0xff]  ;;  %v175_v48 = vld [vmem:[#allocation5 + $0x238] sm:$0xff]  ;;  %v176_v50 = vld [vmem:[#allocation5 + $0x240] sm:$0xff] }
  0x74   :  { %1075 = vmatpush3.bf16.msra.mxu1 %v1074_v13  ;;  %v1094_v49 = vpack.c.bf16 %v175_v48, %v174_v47  ;;  %v177_v51 = vld [vmem:[#allocation5 + $0x248] sm:$0xff]  ;;  %v178_v53 = vld [vmem:[#allocation5 + $0x250] sm:$0xff]  ;;  %v179_v54 = vld [vmem:[#allocation5 + $0x258] sm:$0xff] }
  0x75   :  { %1077 = vmatprep.subr.bf16.mxu1 %v1076_v18  ;;  %v1097_v52 = vpack.c.bf16 %v177_v51, %v176_v50  ;;  %v1100_v55 = vpack.c.bf16 %v179_v54, %v178_v53  ;;  %v180_v56 = vld [vmem:[#allocation5 + $0x260] sm:$0xff]  ;;  %v181_v57 = vld [vmem:[#allocation5 + $0x268] sm:$0xff]  ;;  %v182_v59 = vld [vmem:[#allocation5 + $0x270] sm:$0xff] }
  0x76   :  { %1047 = vmatpush3.bf16.msra.mxu0 %v1046_v24  ;;  %v1103_v58 = vpack.c.bf16 %v181_v57, %v180_v56  ;;  %v183_v60 = vld [vmem:[#allocation5 + $0x278] sm:$0xff]  ;;  %v403_v63 = vld [vmem:[#allocation7] sm:$0xff]  ;;  %v404_v0 = vld [vmem:[#allocation7 + $0x8] sm:$0xff] }
  0x77   :  { %1049 = vmatprep.subr.bf16.mxu0 %v1048_v26  ;;  %v1106_v61 = vpack.c.bf16 %v183_v60, %v182_v59  ;;  %v103_v62 = vld [vmem:[#allocation2 + $0x20] sm:$0xff]  ;;  %v405_v1 = vld [vmem:[#allocation7 + $0x10] sm:$0xff]  ;;  %v1109_v2 = vpack.c.bf16 %v404_v0, %v403_v63  ;;  %v407_v5 = vld [vmem:[#allocation7 + $0x20] sm:$0xff] }
  0x78   :  { %1079 = vmatpush3.bf16.msra.mxu1 %v1078_v25  ;;  %v406_v3 = vld [vmem:[#allocation7 + $0x18] sm:$0xff]  ;;  %v408_v6 = vld [vmem:[#allocation7 + $0x28] sm:$0xff]  ;;  %v409_v8 = vld [vmem:[#allocation7 + $0x30] sm:$0xff] }
  0x79   :  { %1081 = vmatprep.subr.bf16.mxu1 %v1080_v29  ;;  %v1112_v4 = vpack.c.bf16 %v406_v3, %v405_v1  ;;  %v1115_v7 = vpack.c.bf16 %v408_v6, %v407_v5  ;;  %v410_v9 = vld [vmem:[#allocation7 + $0x38] sm:$0xff]  ;;  %v411_v11 = vld [vmem:[#allocation7 + $0x40] sm:$0xff]  ;;  %v412_v12 = vld [vmem:[#allocation7 + $0x48] sm:$0xff] }
  0x7a   :  { %1051 = vmatpush3.bf16.msra.mxu0 %v1050_v32  ;;  %v1118_v10 = vpack.c.bf16 %v410_v9, %v409_v8  ;;  %v1121_v13 = vpack.c.bf16 %v412_v12, %v411_v11  ;;  %v413_v14 = vld [vmem:[#allocation7 + $0x50] sm:$0xff]  ;;  %v414_v15 = vld [vmem:[#allocation7 + $0x58] sm:$0xff]  ;;  %v415_v17 = vld [vmem:[#allocation7 + $0x60] sm:$0xff] }
  0x7b   :  { %1084 = vmatprep.subr.bf16.mxu0 %v1375_v38  ;;  %v1124_v16 = vpack.c.bf16 %v414_v15, %v413_v14  ;;  %v416_v18 = vld [vmem:[#allocation7 + $0x68] sm:$0xff]  ;;  %v417_v20 = vld [vmem:[#allocation7 + $0x70] sm:$0xff]  ;;  %v418_v21 = vld [vmem:[#allocation7 + $0x78] sm:$0xff] }
  0x7c   :  { %1083 = vmatpush3.bf16.msra.mxu1 %v1082_v33  ;;  %v1127_v19 = vpack.c.bf16 %v416_v18, %v415_v17  ;;  %v1130_v22 = vpack.c.bf16 %v418_v21, %v417_v20  ;;  %v497_v23 = vld [vmem:[#allocation8] sm:$0xff]  ;;  %v498_v24 = vld [vmem:[#allocation8 + $0x8] sm:$0xff]  ;;  %v499_v25 = vld [vmem:[#allocation8 + $0x10] sm:$0xff] }
  0x7d   :  { %1108 = vmatprep.subr.bf16.mxu1 %v1375_v38  ;;  %256 = vmatmul.mubr.f32.vlgmr.msra.gmra.mrb[0].mxu0 %v99_v36  ;;  %v1133_v26 = vpack.c.bf16 %v498_v24, %v497_v23  ;;  %v500_v27 = vld [vmem:[#allocation8 + $0x18] sm:$0xff]  ;;  %v501_v29 = vld [vmem:[#allocation8 + $0x20] sm:$0xff]  ;;  %v502_v30 = vld [vmem:[#allocation8 + $0x28] sm:$0xff] }
  0x7e   :  { %1086 = vmatpush3.bf16.msra.mxu0 %v1085_v37  ;;  %912 = vmatprep.mubr.msk.f32.mxu0 %vm1376_vm0, %v1377_v45  ;;  %v1136_v28 = vpack.c.bf16 %v500_v27, %v499_v25  ;;  %v1139_v31 = vpack.c.bf16 %v502_v30, %v501_v29  ;;  %v503_v32 = vld [vmem:[#allocation8 + $0x30] sm:$0xff]  ;;  %v504_v33 = vld [vmem:[#allocation8 + $0x38] sm:$0xff]  ;;  %v505_v35 = vld [vmem:[#allocation8 + $0x40] sm:$0xff] }
  0x7f   :  { %326 = vmatmul.mubr.f32.vlgmr.msra.gmra.mrb[0].mxu1 %v101_v39  ;;  %1087 = vmatprep.subr.bf16.mxu0 %v1375_v38  ;;  %v1142_v34 = vpack.c.bf16 %v504_v33, %v503_v32  ;;  %v506_v36 = vld [vmem:[#allocation8 + $0x48] sm:$0xff]  ;;  %v739_v40 = vld [vmem:[%s1590_s2] ss:$0 sm:$0xff]  ;;  %v507_v53 = vld [vmem:[#allocation8 + $0x50] sm:$0xff] }
  0x80   :  { %947 = vmatprep.mubr.msk.f32.mxu1 %vm1376_vm0, %v1377_v45  ;;  %1110 = vmatpush3.bf16.msra.mxu1 %v1109_v2  ;;  %v1145_v37 = vpack.c.bf16 %v506_v36, %v505_v35  ;;  %v508_v54 = vld [vmem:[#allocation8 + $0x58] sm:$0xff]  ;;  %v509_v56 = vld [vmem:[#allocation8 + $0x60] sm:$0xff]  ;;  %v510_v57 = vld [vmem:[#allocation8 + $0x68] sm:$0xff] }
  0x81   :  { %1111 = vmatprep.subr.bf16.mxu1 %v1375_v38  ;;  %v511_v59 = vld [vmem:[#allocation8 + $0x70] sm:$0xff]  ;;  %v512_v60 = vld [vmem:[#allocation8 + $0x78] sm:$0xff]  ;;  %v595_v5 = vld [vmem:[#allocation10 + $0x8] sm:$0xff] }
  0x82   :  { %1089 = vmatpush3.bf16.msra.mxu0 %v1088_v42  ;;  %v596_v6 = vld [vmem:[#allocation10 + $0x10] sm:$0xff]  ;;  %v597_v8 = vld [vmem:[#allocation10 + $0x18] sm:$0xff]  ;;  %v599_v11 = vld [vmem:[#allocation10 + $0x28] sm:$0xff] }
  0x83   :  { %1090 = vmatprep.subr.bf16.mxu0 %v1375_v38  ;;  %v1160_v9 = vpack.c.bf16 %v597_v8, %v596_v6  ;;  %v601_v14 = vld [vmem:[#allocation10 + $0x38] sm:$0xff]  ;;  %v602_v20 = vld [vmem:[#allocation10 + $0x40] sm:$0xff]  ;;  %v603_v21 = vld [vmem:[#allocation10 + $0x48] sm:$0xff] }
  0x84   :  { %1113 = vmatpush3.bf16.msra.mxu1 %v1112_v4  ;;  %v594_v4 = vld [vmem:[#allocation10] sm:$0xff]  ;;  %v604_v23 = vld [vmem:[#allocation10 + $0x50] sm:$0xff]  ;;  %v605_v24 = vld [vmem:[#allocation10 + $0x58] sm:$0xff] }
  0x85   :  { %1114 = vmatprep.subr.bf16.mxu1 %v1375_v38  ;;  %v1172_v25 = vpack.c.bf16 %v605_v24, %v604_v23  ;;  %v607_v27 = vld [vmem:[#allocation10 + $0x68] sm:$0xff]  ;;  %v608_v29 = vld [vmem:[#allocation10 + $0x70] sm:$0xff]  ;;  %v609_v30 = vld [vmem:[#allocation10 + $0x78] sm:$0xff] }
  0x86   :  { %1092 = vmatpush3.bf16.msra.mxu0 %v1091_v46 }
  0x87   :  { %1093 = vmatprep.subr.bf16.mxu0 %v1375_v38 }
  0x88   :  { %1116 = vmatpush3.bf16.msra.mxu1 %v1115_v7  ;;  %v1157_v7 = vpack.c.bf16 %v595_v5, %v594_v4 }
  0x89   :  { %1117 = vmatprep.subr.bf16.mxu1 %v1375_v38 }
  0x8a   :  { %1095 = vmatpush3.bf16.msra.mxu0 %v1094_v49 }
  0x8b   :  { %1096 = vmatprep.subr.bf16.mxu0 %v1375_v38 }
  0x8c   :  { %1119 = vmatpush3.bf16.msra.mxu1 %v1118_v10  ;;  %v598_v10 = vld [vmem:[#allocation10 + $0x20] sm:$0xff] }
  0x8d   :  { %1120 = vmatprep.subr.bf16.mxu1 %v1375_v38  ;;  %v1163_v12 = vpack.c.bf16 %v599_v11, %v598_v10 }
  0x8e   :  { %1098 = vmatpush3.bf16.msra.mxu0 %v1097_v52 }
  0x8f   :  { %1099 = vmatprep.subr.bf16.mxu0 %v1375_v38 }
  0x90   :  { %1122 = vmatpush3.bf16.msra.mxu1 %v1121_v13  ;;  %v600_v13 = vld [vmem:[#allocation10 + $0x30] sm:$0xff] }
  0x91   :  { %1123 = vmatprep.subr.bf16.mxu1 %v1375_v38  ;;  %v1166_v15 = vpack.c.bf16 %v601_v14, %v600_v13 }
  0x92   :  { %1101 = vmatpush3.bf16.msra.mxu0 %v1100_v55  ;;  %v1148_v55 = vpack.c.bf16 %v508_v54, %v507_v53 }
  0x93   :  { %1102 = vmatprep.subr.bf16.mxu0 %v1375_v38 }
  0x94   :  { %1125 = vmatpush3.bf16.msra.mxu1 %v1124_v16 }
  0x95   :  { %1126 = vmatprep.subr.bf16.mxu1 %v1375_v38 }
  0x96   :  { %1104 = vmatpush3.bf16.msra.mxu0 %v1103_v58  ;;  %v1151_v58 = vpack.c.bf16 %v510_v57, %v509_v56 }
  0x97   :  { %1105 = vmatprep.subr.bf16.mxu0 %v1375_v38 }
  0x98   :  { %1128 = vmatpush3.bf16.msra.mxu1 %v1127_v19 }
  0x99   :  { %1129 = vmatprep.subr.bf16.mxu1 %v1375_v38 }
  0x9a   :  { %1107 = vmatpush3.bf16.msra.mxu0 %v1106_v61  ;;  %v1154_v61 = vpack.c.bf16 %v512_v60, %v511_v59 }
  0x9b   :  { %1132 = vmatprep.subr.bf16.mxu0 %v1375_v38 }
  0x9c   :  { %1131 = vmatpush3.bf16.msra.mxu1 %v1130_v22  ;;  %v1169_v22 = vpack.c.bf16 %v603_v21, %v602_v20 }
  0x9d   :  { %913 = vmatmul.mubr.f32.vlgmr.msra.gmra.mrb[2].mxu0 %v103_v62  ;;  %1156 = vmatprep.subr.bf16.mxu1 %v1375_v38 }
  0x9e   :  { %982 = vmatprep.mubr.msk.f32.mxu0 %vm1376_vm0, %v1377_v45  ;;  %1134 = vmatpush3.bf16.msra.mxu0 %v1133_v26  ;;  %v606_v26 = vld [vmem:[#allocation10 + $0x60] sm:$0xff] }
  0x9f   :  { %1135 = vmatprep.subr.bf16.mxu0 %v1375_v38 }
  0xa2   :  { %1137 = vmatpush3.bf16.msra.mxu0 %v1136_v28  ;;  %v1175_v28 = vpack.c.bf16 %v607_v27, %v606_v26 }
  0xa3   :  { %1138 = vmatprep.subr.bf16.mxu0 %v1375_v38 }
  0xa6   :  { %1140 = vmatpush3.bf16.msra.mxu0 %v1139_v31  ;;  %v1178_v31 = vpack.c.bf16 %v609_v30, %v608_v29 }
  0xa7   :  { %1141 = vmatprep.subr.bf16.mxu0 %v1375_v38 }
  0xaa   :  { %1143 = vmatpush3.bf16.msra.mxu0 %v1142_v34 }
  0xab   :  { %1144 = vmatprep.subr.bf16.mxu0 %v1375_v38 }
  0xae   :  { %1146 = vmatpush3.bf16.msra.mxu0 %v1145_v37  ;;  %v687_v37 = vlaneseq }
  0xaf   :  { %1147 = vmatprep.subr.bf16.mxu0 %v1375_v38 }
  0xb2   :  { %1149 = vmatpush3.bf16.msra.mxu0 %v1148_v55 }
  0xb3   :  { %1150 = vmatprep.subr.bf16.mxu0 %v1375_v38 }
  0xb6   :  { %1152 = vmatpush3.bf16.msra.mxu0 %v1151_v58 }
  0xb7   :  { %1153 = vmatprep.subr.bf16.mxu0 %v1375_v38 }
  0xba   :  { %1155 = vmatpush3.bf16.msra.mxu0 %v1154_v61 }
 0x150   :  { %v774_v39 = vpop.f32.mrb[0].mxu0 }
 0x151   :  { %v775_v41 = vpop.f32.mrb[1].mxu0 }
 0x152   :  { %v809_v42 = vpop.f32.mrb[0].mxu1  ;;  %v776_v43 = vadd.f32 %v775_v41, %v774_v39  ;;  %v688_v39 = vand.u32 127, %v687_v37 }
 0x153   :  { %v810_v44 = vpop.f32.mrb[1].mxu1 }
 0x154   :  { %v811_v46 = vadd.f32 %v810_v44, %v809_v42  ;;  %v258_v47 = vadd.f32 %v776_v43, %v739_v40  ;;  %vm689_vm1 = vcmp.ge.s32.totalorder %v688_v39, 1  ;;  %vm690_vm2 = vcmp.lt.s32.totalorder %v688_v39, 3  ;;  %v741_v40 = vld [vmem:[%s1595_s7] ss:$0 sm:$0xff]  ;;  %s1314_s7 = scalar_lea.vmem %s715_s30, 128 }
 0x155   :  { %vm1556_vm3 = vmand %vm689_vm1, %vm690_vm2  ;;  %p1315_p12 = scmp.ne.s32.totalorder %s715_s30, %s1314_s7  ;;  %p1320_p0 = scmp.lt.s32.totalorder %s1314_s7, %s1314_s7 }
 0x156   :  { %v328_v48 = vadd.f32 %v811_v46, %v258_v47 }
 0x157   :  { %p1321_p1 = por %p1320_p0, %p1319_p13 }
 0x159   :  { %p1322_p2 = pnand %p1321_p1, %p1315_p12 }
 0x170   :  { %v397_v49 = vpop.f32.mrb[2].mxu0 }
 0x171   :  { %v398_v50 = vadd.f32 %v397_v49, %v328_v48  ;;  %v914_v51 = vpop.f32.mrb[3].mxu0 }
 0x173   :  { %1192 = vtanh.f32 %v398_v50 }
 0x17d   :  { %v1534_v52 = vpop.eup %1192 }
 0x17e   :  { %402 = vst [vmem:[#allocation11] sm:$0xff] %v1534_v52  ;;  %948 = vmatmul.mubr.f32.vlgmr.msra.gmra.mrb[2].mxu1 %v1534_v52 }
 0x17f   :  { %1017 = vmatprep.mubr.msk.f32.mxu1 %vm1376_vm0, %v1377_v45  ;;  %v740_v45 = vld [vmem:[%s1592_s4] ss:$0 sm:$0xff]  ;;  %1158 = vmatpush3.bf16.msra.mxu1 %v1157_v7 }
 0x180   :  { %1159 = vmatprep.subr.bf16.mxu1 %v1375_v38 }
 0x183   :  { %1161 = vmatpush3.bf16.msra.mxu1 %v1160_v9 }
 0x184   :  { %1162 = vmatprep.subr.bf16.mxu1 %v1375_v38 }
 0x187   :  { %1164 = vmatpush3.bf16.msra.mxu1 %v1163_v12 }
 0x188   :  { %1165 = vmatprep.subr.bf16.mxu1 %v1375_v38 }
 0x18b   :  { %1167 = vmatpush3.bf16.msra.mxu1 %v1166_v15 }
 0x18c   :  { %1168 = vmatprep.subr.bf16.mxu1 %v1375_v38 }
 0x18f   :  { %1170 = vmatpush3.bf16.msra.mxu1 %v1169_v22 }
 0x190   :  { %1171 = vmatprep.subr.bf16.mxu1 %v1375_v38 }
 0x193   :  { %1173 = vmatpush3.bf16.msra.mxu1 %v1172_v25 }
 0x194   :  { %1174 = vmatprep.subr.bf16.mxu1 %v1375_v38 }
 0x197   :  { %1176 = vmatpush3.bf16.msra.mxu1 %v1175_v28 }
 0x198   :  { %1177 = vmatprep.subr.bf16.mxu1 %v1375_v38 }
 0x19b   :  { %1179 = vmatpush3.bf16.msra.mxu1 %v1178_v31 }
 0x251   :  { %v492_v62 = vpop.f32.mrb[2].mxu1 }
 0x252   :  { %v493_v63 = vadd.f32 %v740_v45, %v492_v62  ;;  %v949_v0 = vpop.f32.mrb[3].mxu1 }
 0x254   :  { %1194 = vtanh.f32 %v493_v63 }
 0x25e   :  { %v1195_v1 = vpop.eup %1194 }
 0x25f   :  { %983 = vmatmul.mubr.f32.vlgmr.msra.gmra.mrb[4].mxu0 %v1195_v1 }
 0x332   :  { %v579_v2 = vpop.f32.mrb[4].mxu0 }
 0x333   :  { %583 = vmax.xlane.f32.xlu0 %v579_v2  ;;  %v984_v3 = vpop.f32.mrb[5].mxu0 }
 0x3c0   :  { %v584_v16 = vpop.xlane.xlu0 %583 }
 0x3c1   :  { %v585_v17 = vsub.f32 %v579_v2, %v584_v16 }
 0x3c3   :  { %v586_v18 = vmul.f32 1.442695, %v585_v17 }
 0x3c5   :  { %1196 = vpow2.f32 %v586_v18 }
 0x3cf   :  { %v1197_v19 = vpop.eup %1196 }
 0x3d0   :  { %588 = vadd.xlane.f32.xlu0 %v1197_v19 }
 0x45d   :  { %v589_v32 = vpop.xlane.xlu0 %588 }
 0x45e   :  { %v590_v33 = vmul.f32 0.03125, %v589_v32 }
 0x460   :  { %1198 = vrcp.f32 %v590_v33 }
 0x46a   :  { %v1199_v34 = vpop.eup %1198 }
 0x46b   :  { %v592_v35 = vmul.f32 %v1199_v34, %v1197_v19 }
 0x46d   :  { %v593_v36 = vmul.f32 %v1534_v52, %v592_v35 }
 0x46f   :  { %1018 = vmatmul.mubr.f32.vlgmr.msra.gmra.mrb[4].mxu1 %v593_v36 }
 0x542   :  { %v683_v41 = vpop.f32.mrb[4].mxu1 }
 0x543   :  { %v684_v42 = vadd.f32 %v741_v40, %v683_v41  ;;  %v1019_v43 = vpop.f32.mrb[5].mxu1 }
 0x545   :  { %v692_v44 = vsel %vm1556_vm3, %v684_v42, -inf }
 0x546   :  { %693 = vmax.xlane.f32.xlu1 %v692_v44 }
 0x5d3   :  { %v694_v46 = vpop.xlane.xlu1 %693 }
 0x5d4   :  { %v695_v47 = vsub.f32 %v692_v44, %v694_v46 }
 0x5d6   :  { %v696_v48 = vmul.f32 1.442695, %v695_v47 }
 0x5d8   :  { %1200 = vpow2.f32 %v696_v48 }
 0x5e2   :  { %v1201_v49 = vpop.eup %1200 }
 0x5e3   :  { %698 = vadd.xlane.f32.xlu1 %v1201_v49 }
 0x5e4   :  { %1325 = shalt.err (!%p1322_p2)
}
 0x5e5   :  { %s1326_s13 = scalar_lea.hbm %s1596_s8, 128 }
 0x5e6   :  { %p1327_p3 = scmp.ne.s32.totalorder %s1596_s8, %s1326_s13  ;;  %p1330_p4 = scmp.lt.u32.totalorder %s1326_s13, %s1596_s8 }
 0x5e8   :  { %p1332_p5 = pnand %p1330_p4, %p1327_p3 }
 0x5ea   :  { %1335 = shalt.err (!%p1332_p5)
}
 0x5eb   :  { %717 = dma.vmem_to_hbm [thread:$0]  %s715_s30, 128, %s1596_s8, [#allocation4]   ;;  %vm703_vm4 = vcmp.eq.s32.totalorder %v688_v39, 0 }
 0x5ec   :  { %s1379_s16 = smov [#allocation12]  }
 0x5ed   :  { %s724_s17 = sshll.u32 %s1379_s16, 4  ;;  %s725_s17 = int_to_ptr.vmem [resolvable:$true] %s724_s17 }
 0x5ee   :  { %s1336_s18 = scalar_lea.vmem %s725_s17, 128  ;;  %p1341_p7 = scmp.lt.s32.totalorder %s725_s17, %s725_s17 }
 0x5ef   :  { %p1337_p6 = scmp.ne.s32.totalorder %s725_s17, %s1336_s18  ;;  %p1342_p8 = scmp.lt.s32.totalorder %s1336_s18, %s1336_s18 }
 0x5f1   :  { %p1343_p9 = por %p1342_p8, %p1341_p7 }
 0x5f3   :  { %p1344_p10 = pnand %p1343_p9, %p1337_p6 }
 0x670   :  { %v699_v50 = vpop.xlane.xlu1 %698 }
 0x671   :  { %1202 = vlog2.f32 %v699_v50 }
 0x67b   :  { %v1203_v51 = vpop.eup %1202 }
 0x67c   :  { %v701_v52 = vmul.f32 0.6931472, %v1203_v51 }
 0x67e   :  { %v702_v53 = vadd.f32 %v701_v52, %v694_v46 }
 0x680   :  { %v704_v54 = vsub.f32 %v684_v42, %v702_v53 }
 0x682   :  { %v705_v55 = vsel %vm1556_vm3, %v704_v54, 0.0 }
 0x683   :  { %v706_v56 = vsel %vm703_vm4, %v684_v42, %v705_v55 }
 0x684   :  { %707 = vst [vmem:[#allocation12] sm:$0xff] %v706_v56 }
 0x685   :  { %1347 = shalt.err (!%p1344_p10)
}
 0x686   :  { %s1348_s22 = scalar_lea.hbm %s1597_s9, 128 }
 0x687   :  { %p1349_p11 = scmp.ne.s32.totalorder %s1597_s9, %s1348_s22  ;;  %p1352_p12 = scmp.lt.u32.totalorder %s1348_s22, %s1597_s9 }
 0x689   :  { %p1354_p13 = pnand %p1352_p12, %p1349_p11 }
 0x68b   :  { %1357 = shalt.err (!%p1354_p13)
}
 0x68c   :  { %727 = dma.vmem_to_hbm [thread:$0]  %s725_s17, 128, %s1597_s9, [#allocation13]  }
 0x68d   :  { %1364 = dma.done.wait [#allocation4], 128  }
 0x68e   :  { %1365 = vsyncadd [#allocation4], 4294967168 }
 0x68f   :  { %1366 = dma.done.wait [#allocation13], 128  }
 0x690   :  { %1367 = vsyncadd [#allocation13], 4294967168 }
 0x691   :  { %734 = vsyncpa [#allocation3], 1 }
 0x692   :  { %735 = vsyncpa [#allocation6], 1 }
 0x693   :  { %736 = vsyncpa [#allocation9], 1 }
 0x694   :  { %737 = vsyncpa [#allocation4], 1 }
 0x695   :  { %738 = vsyncpa [#allocation13], 1 }

</bundles_post_ra>
